<compile_context>
chip_gen: v5e
topology: v5e:2x2
jax: 0.10.0
libtpu: 0.0.40
codegen_flags: <defaults>
</compile_context>

<pallas_src>
import jax
import jax.numpy as jnp
from jax.experimental import pallas as pl
from jax.experimental.pallas import tpu as pltpu


def _round_up(n: int, m: int) -> int:
    return ((n + m - 1) // m) * m


def _choose_tile(B: int, block_b: int, granule: int) -> int:
    """Batch-tile size: rounded to the layout granule, capped at the batch, and capped at
    ~B/2 for large batches so the 1-D grid has >=2 steps (v7x megacore sharding)."""
    tb = max(granule, _round_up(block_b, granule))
    if B > 2 * granule:
        tb = min(tb, _round_up(pl.cdiv(B, 2), granule))
    return min(tb, _round_up(B, granule))


def _compiler_params():
    return pltpu.CompilerParams(
        dimension_semantics=("parallel",),      # v7x: shard batch grid over 2 TCs
        vmem_limit_bytes=32 * 1024 * 1024,      # legal on v5e/v6e/v7x; covers big tiles
    )


def _cost_estimate(B: int):
    return pl.CostEstimate(
        flops=2 * B * (20 * 64 + 64 * 2),
        transcendentals=0,
        bytes_accessed=B * (20 + 2) * 4 + (20 * 64 + 64 + 64 * 2 + 2) * 4,
    )


# ---------------------------------------------------------------------------
# Kernels
# ---------------------------------------------------------------------------

def mlp_kernel(x_ref, w1_ref, b1_ref, w2_ref, b2_ref, o_ref):
    """Row-major tile: x (tb, 20) f32 -> logits (tb, 2) f32. Fused fc1+ReLU+fc2."""
    x = x_ref[...].astype(jnp.bfloat16)                          # in-kernel cast (VPU)
    h = jnp.dot(x, w1_ref[...], preferred_element_type=jnp.float32)   # (tb, 64) f32 acc
    h = jnp.maximum(h + b1_ref[...], 0.0)                        # bias + ReLU in f32
    y = jnp.dot(h.astype(jnp.bfloat16), w2_ref[...],
                preferred_element_type=jnp.float32)              # (tb, 2) f32 acc
    o_ref[...] = (y + b2_ref[...]).astype(o_ref.dtype)


def mlp_kernel_fm(xt_ref, w1t_ref, b1_ref, w2t_ref, b2_ref, ot_ref):
    """Features-major (lane-dense) tile: x_t (20, tb) f32 -> logits_t (2, tb) f32."""
    xt = xt_ref[...].astype(jnp.bfloat16)                        # (20, tb)
    h = jnp.dot(w1t_ref[...], xt, preferred_element_type=jnp.float32)  # (64, tb)
    h = jnp.maximum(h + b1_ref[...], 0.0)                        # (64, 1) bias broadcast
    y = jnp.dot(w2t_ref[...], h.astype(jnp.bfloat16),
                preferred_element_type=jnp.float32)              # (2, tb)
    ot_ref[...] = (y + b2_ref[...]).astype(ot_ref.dtype)


# ---------------------------------------------------------------------------
# Wrappers
# ---------------------------------------------------------------------------

def audio_classifier_forward(x, w1, b1, w2, b2, *, block_b=4096):
    """Drop-in path. x: (B, 20) f32 (left untouched in HBM). Returns logits (B, 2) f32."""
    B, F = x.shape
    assert F == 20
    tb = _choose_tile(B, block_b, 8)            # f32 input block -> native 8-row granule

    w1c = w1.astype(jnp.bfloat16)               # tiny, one-time host-side casts
    w2c = w2.astype(jnp.bfloat16)
    b1f = b1.astype(jnp.float32).reshape(1, 64)
    b2f = b2.astype(jnp.float32).reshape(1, 2)

    return pl.pallas_call(
        mlp_kernel,
        out_shape=jax.ShapeDtypeStruct((B, 2), jnp.float32),
        grid=(pl.cdiv(B, tb),),                 # ragged last block masked, no jnp.pad
        in_specs=[
            pl.BlockSpec((tb, 20), lambda i: (i, 0)),   # streamed f32 batch tile
            pl.BlockSpec((20, 64), lambda i: (0, 0)),   # weights stay VMEM-resident
            pl.BlockSpec((1, 64), lambda i: (0, 0)),
            pl.BlockSpec((64, 2), lambda i: (0, 0)),
            pl.BlockSpec((1, 2), lambda i: (0, 0)),
        ],
        out_specs=pl.BlockSpec((tb, 2), lambda i: (i, 0)),
        compiler_params=_compiler_params(),
        cost_estimate=_cost_estimate(B),
    )(x, w1c, b1f, w2c, b2f)


def audio_classifier_forward_fm(x_t, w1, b1, w2, b2, *, block_b=16384):
    """Lane-dense path for producers that already hold x features-major.

    x_t: (20, B) f32. Returns logits transposed: (2, B) f32.
    Every block (input, weights, output) is lane-dense; preferred on all generations.
    """
    F, B = x_t.shape
    assert F == 20
    tb = _choose_tile(B, block_b, 128)          # 128-lane granule

    w1t = w1.T.astype(jnp.bfloat16)             # (64, 20)
    w2t = w2.T.astype(jnp.bfloat16)             # (2, 64)
    b1f = b1.astype(jnp.float32).reshape(64, 1)
    b2f = b2.astype(jnp.float32).reshape(2, 1)

    return pl.pallas_call(
        mlp_kernel_fm,
        out_shape=jax.ShapeDtypeStruct((2, B), jnp.float32),
        grid=(pl.cdiv(B, tb),),
        in_specs=[
            pl.BlockSpec((20, tb), lambda i: (0, i)),   # lane-dense f32 batch tile
            pl.BlockSpec((64, 20), lambda i: (0, 0)),
            pl.BlockSpec((64, 1), lambda i: (0, 0)),
            pl.BlockSpec((2, 64), lambda i: (0, 0)),
            pl.BlockSpec((2, 1), lambda i: (0, 0)),
        ],
        out_specs=pl.BlockSpec((2, tb), lambda i: (0, i)),   # lane-dense output
        compiler_params=_compiler_params(),
        cost_estimate=_cost_estimate(B),
    )(x_t, w1t, b1f, w2t, b2f)


# ---------------------------------------------------------------------------
# Reference + init
# ---------------------------------------------------------------------------

def reference_forward(x, w1, b1, w2, b2, compute_dtype=jnp.bfloat16):
    """Plain-JAX reference emulating the kernel's bf16 rounding / f32 accumulation."""
    f32 = jnp.float32
    xc = x.astype(compute_dtype).astype(f32)
    w1c = w1.astype(compute_dtype).astype(f32)
    w2c = w2.astype(compute_dtype).astype(f32)
    h = jnp.maximum(xc @ w1c + b1.astype(f32).reshape(1, -1), 0.0)
    hc = h.astype(compute_dtype).astype(f32)
    return hc @ w2c + b2.astype(f32).reshape(1, -1)


def init_params(key):
    """Mimics nn.Linear default init (uniform +-1/sqrt(fan_in))."""
    k1, k2, k3, k4 = jax.random.split(key, 4)
    bound1 = 1.0 / jnp.sqrt(20.0)
    bound2 = 1.0 / jnp.sqrt(64.0)
    w1 = jax.random.uniform(k1, (20, 64), jnp.float32, -bound1, bound1)
    b1 = jax.random.uniform(k2, (64,), jnp.float32, -bound1, bound1)
    w2 = jax.random.uniform(k3, (64, 2), jnp.float32, -bound2, bound2)
    b2 = jax.random.uniform(k4, (2,), jnp.float32, -bound2, bound2)
    return w1, b1, w2, b2


if __name__ == "__main__":
    key = jax.random.PRNGKey(0)
    kx, kp = jax.random.split(key)
    w1, b1, w2, b2 = init_params(kp)

    # 1) Small batch through the drop-in row-major path (single exact block).
    x_small = jax.random.normal(kx, (8, 20), jnp.float32)
    out_small = jax.block_until_ready(
        audio_classifier_forward(x_small, w1, b1, w2, b2))
    ref_small = reference_forward(x_small, w1, b1, w2, b2)
    assert out_small.shape == (8, 2)
    assert jnp.allclose(out_small, ref_small, atol=1e-3, rtol=1e-3)

    # 2) Ragged batch, small explicit tile: grid of 4, masked last block (200 = 3*64 + 8).
    x_big = jax.random.normal(kx, (200, 20), jnp.float32)
    out_big = jax.block_until_ready(
        audio_classifier_forward(x_big, w1, b1, w2, b2, block_b=64))
    ref_big = reference_forward(x_big, w1, b1, w2, b2)
    assert out_big.shape == (200, 2)
    assert jnp.allclose(out_big, ref_big, atol=1e-3, rtol=1e-3)

    # 3) Default (auto-tiled) row-major path on the same ragged batch (2 grid steps).
    out_def = jax.block_until_ready(audio_classifier_forward(x_big, w1, b1, w2, b2))
    assert jnp.allclose(out_def, ref_big, atol=1e-3, rtol=1e-3)

    # 4) Lane-dense features-major path (producer supplies (20,B); logits come back (2,B)).
    out_fm = jax.block_until_ready(
        audio_classifier_forward_fm(x_big.T, w1, b1, w2, b2, block_b=128))
    assert out_fm.shape == (2, 200)
    assert jnp.allclose(out_fm.T, ref_big, atol=1e-3, rtol=1e-3)

    print("KERNEL_OK")
</pallas_src>

<mosaic_0001>
module attributes {stable_mosaic.version = 11 : i64} {
  func.func @mlp_kernel(%arg0: i32, %arg1: memref<8x20xf32, #tpu.memory_space<vmem>>, %arg2: memref<20x64xbf16, #tpu.memory_space<vmem>>, %arg3: memref<1x64xf32, #tpu.memory_space<vmem>>, %arg4: memref<64x2xbf16, #tpu.memory_space<vmem>>, %arg5: memref<1x2xf32, #tpu.memory_space<vmem>>, %arg6: memref<8x2xf32, #tpu.memory_space<vmem>>) attributes {dimension_semantics = [#tpu.dimension_semantics<parallel>], iteration_bounds = array<i64: 1>, scalar_prefetch = 0 : i64, scratch_operands = 0 : i64, tpu.core_type = #tpu.core_type<tc>, window_params = [{transform_indices = @transform_0, window_bounds = array<i64: 8, 20>}, {pipeline_mode = #tpu.pipeline_mode<synchronous>, transform_indices = @transform_1, window_bounds = array<i64: 20, 64>}, {pipeline_mode = #tpu.pipeline_mode<synchronous>, transform_indices = @transform_2, window_bounds = array<i64: 1, 64>}, {pipeline_mode = #tpu.pipeline_mode<synchronous>, transform_indices = @transform_3, window_bounds = array<i64: 64, 2>}, {pipeline_mode = #tpu.pipeline_mode<synchronous>, transform_indices = @transform_4, window_bounds = array<i64: 1, 2>}, {transform_indices = @transform_5, window_bounds = array<i64: 8, 2>}]} {
    %c0 = arith.constant 0 : index
    %c0_0 = arith.constant 0 : index
    %0 = vector.load %arg1[%c0, %c0_0] : memref<8x20xf32, #tpu.memory_space<vmem>>, vector<8x20xf32>
    %1 = arith.truncf %0 : vector<8x20xf32> to vector<8x20xbf16>
    %c0_1 = arith.constant 0 : index
    %c0_2 = arith.constant 0 : index
    %2 = vector.load %arg2[%c0_1, %c0_2] : memref<20x64xbf16, #tpu.memory_space<vmem>>, vector<20x64xbf16>
    %cst = arith.constant dense<0.000000e+00> : vector<8x64xf32>
    %3 = tpu.matmul %1, %2, %cst {dimension_numbers = #tpu.dot_dimension_numbers<[1], [0], [0], [1], [0, 0, 1, 1], [], []>} : vector<8x20xbf16>, vector<20x64xbf16>, vector<8x64xf32> -> vector<8x64xf32>
    %c0_3 = arith.constant 0 : index
    %c0_4 = arith.constant 0 : index
    %4 = vector.load %arg3[%c0_3, %c0_4] : memref<1x64xf32, #tpu.memory_space<vmem>>, vector<1x64xf32>
    %5 = vector.broadcast %4 : vector<1x64xf32> to vector<8x64xf32>
    %6 = arith.addf %3, %5 : vector<8x64xf32>
    %cst_5 = arith.constant 0.000000e+00 : f32
    %7 = vector.broadcast %cst_5 : f32 to vector<8x64xf32>
    %8 = arith.maximumf %6, %7 : vector<8x64xf32>
    %9 = arith.truncf %8 : vector<8x64xf32> to vector<8x64xbf16>
    %c0_6 = arith.constant 0 : index
    %c0_7 = arith.constant 0 : index
    %10 = vector.load %arg4[%c0_6, %c0_7] : memref<64x2xbf16, #tpu.memory_space<vmem>>, vector<64x2xbf16>
    %cst_8 = arith.constant dense<0.000000e+00> : vector<8x2xf32>
    %11 = tpu.matmul %9, %10, %cst_8 {dimension_numbers = #tpu.dot_dimension_numbers<[1], [0], [0], [1], [0, 0, 1, 1], [], []>} : vector<8x64xbf16>, vector<64x2xbf16>, vector<8x2xf32> -> vector<8x2xf32>
    %c0_9 = arith.constant 0 : index
    %c0_10 = arith.constant 0 : index
    %12 = vector.load %arg5[%c0_9, %c0_10] : memref<1x2xf32, #tpu.memory_space<vmem>>, vector<1x2xf32>
    %13 = vector.broadcast %12 : vector<1x2xf32> to vector<8x2xf32>
    %14 = arith.addf %11, %13 : vector<8x2xf32>
    %c0_11 = arith.constant 0 : index
    %c0_12 = arith.constant 0 : index
    %15 = vector.load %arg6[%c0_11, %c0_12] : memref<8x2xf32, #tpu.memory_space<vmem>>, vector<8x2xf32>
    tpu.vector_store %arg6[%c0_11, %c0_12], %14 {strides = array<i32>} : memref<8x2xf32, #tpu.memory_space<vmem>>, vector<8x2xf32>,
    return
  }
  func.func @transform_0(%arg0: i32) -> (i32, i32) {
    %c0_i32 = arith.constant 0 : i32
    %c0_i32_0 = arith.constant 0 : i32
    return %arg0, %c0_i32 : i32, i32
  }
  func.func @transform_1(%arg0: i32) -> (i32, i32) {
    %c0_i32 = arith.constant 0 : i32
    %c0_i32_0 = arith.constant 0 : i32
    %c0_i32_1 = arith.constant 0 : i32
    return %c0_i32, %c0_i32_0 : i32, i32
  }
  func.func @transform_2(%arg0: i32) -> (i32, i32) {
    %c0_i32 = arith.constant 0 : i32
    %c0_i32_0 = arith.constant 0 : i32
    %c0_i32_1 = arith.constant 0 : i32
    return %c0_i32, %c0_i32_0 : i32, i32
  }
  func.func @transform_3(%arg0: i32) -> (i32, i32) {
    %c0_i32 = arith.constant 0 : i32
    %c0_i32_0 = arith.constant 0 : i32
    %c0_i32_1 = arith.constant 0 : i32
    return %c0_i32, %c0_i32_0 : i32, i32
  }
  func.func @transform_4(%arg0: i32) -> (i32, i32) {
    %c0_i32 = arith.constant 0 : i32
    %c0_i32_0 = arith.constant 0 : i32
    %c0_i32_1 = arith.constant 0 : i32
    return %c0_i32, %c0_i32_0 : i32, i32
  }
  func.func @transform_5(%arg0: i32) -> (i32, i32) {
    %c0_i32 = arith.constant 0 : i32
    %c0_i32_0 = arith.constant 0 : i32
    return %arg0, %c0_i32 : i32, i32
  }
}

</mosaic_0001>

<bundles_post_ra>
// kernel: tpu_custom_call.1
= control target key start
LH: loop header
LB: loop body
LE: loop exit
PB: predicated region body
PF: predicated region fallthrough
CT: control target
= control target key end

     0   :  { %vm43_vm0 = vcmask 1041408   ;;  %vm39_vm1 = vcmask 162816   ;;  %vm98_vm2 = vcmask 523264   ;;  %vm115_vm3 = vcmask 15360   ;;  %s210_s1 = inlined_call_operand.vmem [shape: bf16[20,64], index: 1, kind: input, shape index: {}]   ;;  %s211_s3 = inlined_call_operand.vmem [shape: bf16[64,2], index: 3, kind: input, shape index: {}]   ;;  %s212_s2 = inlined_call_operand.vmem [shape: f32[1,64], index: 2, kind: input, shape index: {}]   ;;  %s213_s0 = inlined_call_operand.vmem [shape: f32[8,20], index: 0, kind: input, shape index: {}]   ;;  %s214_s4 = inlined_call_operand.vmem [shape: f32[1,2], index: 4, kind: input, shape index: {}]   ;;  %s215_s5 = inlined_call_operand.vmem [shape: f32[8,2], index: 5, kind: output, shape index: {}]  }
   0x1   :  { %v25_v0 = vld [vmem:[%s210_s1 + $0x8] sm:$0x3]  ;;  %v147_v2 = vld [vmem:[%s211_s3 + $0x18] sm:$0xff]  ;;  %v146_v4 = vld [vmem:[%s211_s3 + $0x10] sm:$0xff] }
   0x2   :  { %v35_v1 = vunpack.c.l.b16 %v25_v0  ;;  %106 = vmatpush.bf16.msra.mxu1 %v147_v2  ;;  %v143_v6 = vld [vmem:[%s210_s1] sm:$0xff]  ;;  %v145_v9 = vld [vmem:[%s211_s3 + $0x8] sm:$0xff] }
   0x3   :  { %v21_v7 = vld [vmem:[%s213_s0] sm:$0xff] }
   0x4   :  { %v37_v3 = vpack.c.b16 %v35_v1, %v35_v1  ;;  %v22_v8 = vpack.c.bf16 %v21_v7, %v21_v7  ;;  %v144_v10 = vld [vmem:[%s211_s3] sm:$0xff] }
   0x5   :  { %v148_v11 = vld [vmem:[%s212_s2] ss:$0 sm:$0xff] }
   0x6   :  { %v45_v5 = vsel %vm43_vm0, %v37_v3, 0  ;;  %107 = vmatpush.bf16.msra.mxu1 %v146_v4  ;;  %v149_v17 = vld [vmem:[%s214_s4] ss:$0 sm:$0xff] }
   0x7   :  { %53 = vmatpush.bf16.msra.mxu0 %v45_v5 }
   0xa   :  { %108 = vmatpush.bf16.msra.mxu1 %v145_v9 }
   0xb   :  { %54 = vmatpush.bf16.msra.mxu0 %v143_v6 }
   0xe   :  { %125 = vmatmul.msk.bf16.vlgmr.msra.gmra.mxu0 %vm39_vm1, %v22_v8  ;;  %109 = vmatpush.bf16.msra.mxu1 %v144_v10 }
  0x8b   :  { %v56_v12 = vpop.f32.mrf.mxu0 }
  0x8c   :  { %v57_v13 = vadd.f32 %v148_v11, %v56_v12 }
  0x8e   :  { %v60_v14 = vmax.f32 %v57_v13, 0.0 }
  0x90   :  { %v61_v15 = vpack.c.bf16 %v60_v14, %v60_v14 }
  0x92   :  { %142 = vmatmul.msk.bf16.vlgmr.msra.gmra.mxu1 %vm98_vm2, %v61_v15 }
  0x93   :  { %v58_v16 = vpop.f32.mrf.mxu0 }
 0x10f   :  { %v111_v18 = vpop.f32.mrf.mxu1 }
 0x110   :  { %v112_v19 = vadd.f32 %v149_v17, %v111_v18 }
 0x112   :  { %116 = vst.msk [vmem:[%s215_s5] sm:$0xff] %vm115_vm3, %v112_v19 }
 0x117   :  { %v113_v20 = vpop.f32.mrf.mxu1 }

</bundles_post_ra>
